<compile_context>
chip_gen: v7x
topology: tpu7x:2x2x1
jax: 0.10.0
libtpu: 0.0.40
codegen_flags: <defaults>
</compile_context>

<pallas_src>
import numpy as np
import jax
import jax.numpy as jnp
from jax.experimental import pallas as pl
from jax.experimental.pallas import tpu as pltpu


def _penc2d_kernel(freqx_ref, phasex_ref, emby_ref, tmat_ref, out_ref):
    """Writes one (tile_x, tile_yc) block of the flat (X, padded Y*C) encoding."""
    tile_x = out_ref.shape[0]
    cpad = freqx_ref.shape[-1]

    # x table: one sin per (x position, channel); cos == sin(. + pi/2).
    x0 = pl.program_id(1) * tile_x
    xi = (x0 + jax.lax.broadcasted_iota(jnp.int32, (tile_x, cpad), 0)).astype(jnp.float32)
    emb_x = jnp.sin(xi * freqx_ref[...] + phasex_ref[...])

    # Lane-replicate the x table into the flat (y-major, channel-minor) layout
    # with a single bf16 MXU pass against a 0/1 selection matrix (which also
    # applies the d < channels mask).  A bf16 residual pass restores f32
    # accuracy; skipped when the output itself is bf16.
    # TODO(synk): for very large channel counts (cpad >= ~512) a direct per-lane
    # sin(x*freq_flat+phase_flat) path would avoid going MXU-bound on v7x.
    tmat = tmat_ref[...]                                     # (cpad, tile_yc) bf16
    emb_x_hi = emb_x.astype(jnp.bfloat16)
    x_flat = jnp.dot(emb_x_hi, tmat, preferred_element_type=jnp.float32)
    if out_ref.dtype == jnp.float32:
        emb_x_lo = (emb_x - emb_x_hi.astype(jnp.float32)).astype(jnp.bfloat16)
        x_flat = x_flat + jnp.dot(emb_x_lo, tmat, preferred_element_type=jnp.float32)

    # y row is a host-precomputed constant; sublane-broadcast add.
    out_ref[...] = (x_flat + emby_ref[...]).astype(out_ref.dtype)


def _vmem_limit_bytes():
    try:
        cap = pltpu.get_tpu_info().vmem_capacity_bytes   # 128 MiB v5e/v6e, 64 MiB v7x
    except Exception:
        cap = 64 * 1024 * 1024
    return int(min(cap // 2, 64 * 1024 * 1024))


def _pick_tiles(x, yc_pad, cpad, out_itemsize, budget):
    """(tile_x, tile_yc, n_yc) bounded by `budget` bytes of VMEM."""
    # Lane tile: bound the (cpad, tile_yc) bf16 selection matrix to ~budget/3.
    tmat_budget = budget // 3
    if cpad * yc_pad * 2 <= tmat_budget:                    # full width, single-buffered
        tile_yc = yc_pad
    else:                                                   # lane-tiled, double-buffered
        tile_yc = (tmat_budget // (2 * 2 * cpad) // 128) * 128
        tile_yc = min(max(tile_yc, 128), yc_pad)
    n_yc = pl.cdiv(yc_pad, tile_yc)
    tmat_bufs = 1 if n_yc == 1 else 2

    # x tile: double-buffered out block + ~3x f32 intermediates + x-table temps.
    remaining = budget - tmat_bufs * cpad * tile_yc * 2 - 2 * tile_yc * 4
    per_row = 2 * tile_yc * out_itemsize + 3 * tile_yc * 4 + 3 * cpad * 4
    rows = max(8, remaining // max(per_row, 1))
    if rows >= x:
        tile_x = x
        if n_yc == 1 and x > 8:
            # Give a 2-TensorCore part (v7x) at least two grid steps to share.
            half = (x + 1) // 2
            tile_x = min(x, ((half + 7) // 8) * 8)
    else:
        tile_x = min(x, max(8, (rows // 8) * 8))
    return tile_x, tile_yc, n_yc


def positional_encoding_2d(tensor):
    """Returns the positional encoding matrix of shape (B, X, Y, ch)."""
    if tensor.ndim != 4:
        raise RuntimeError("The input tensor has to be 4d!")
    B, X, Y, C = tensor.shape
    out_dtype = tensor.dtype
    itemsize = np.dtype(out_dtype).itemsize

    # ---- deterministic "buffer" setup (matches nn.Module.__init__) ----------
    channels = int(np.ceil(C / 4) * 2)
    inv_freq = 1.0 / (10000.0 ** (np.arange(0, channels, 2, dtype=np.float32) / channels))

    d = np.arange(C)
    freq_c = inv_freq[(d % channels) // 2].astype(np.float32)   # per-channel inv_freq
    phase_c = ((d % 2) * (np.pi / 2)).astype(np.float32)        # odd channel -> cos

    # x-table channel axis padded to a lane/MXU-friendly width (extra cols inert).
    cpad = int(-(-C // 128) * 128)
    freq_x = np.zeros((1, cpad), np.float32); freq_x[0, :C] = freq_c
    phase_x = np.zeros((1, cpad), np.float32); phase_x[0, :C] = phase_c

    # Flat lane axis l = y*C + d (y-major, channel-minor == row-major (Y, C)),
    # zero-padded to a multiple of 128 for wide unmasked stores.
    yc = Y * C
    yc_pad = int(-(-yc // 128) * 128)
    l = np.arange(yc)
    dl = l % C
    is_y = dl >= channels                                        # filled from emb_y
    emb_y = np.zeros((1, yc_pad), np.float32)
    emb_y[0, :yc] = np.where(
        is_y, np.sin((l // C).astype(np.float32) * freq_c[dl] + phase_c[dl]), 0.0)

    # Selection matrix: replicates emb_x[:, d] to every lane with d(l)==d<channels.
    tmat = np.zeros((cpad, yc_pad), np.float32)
    tmat[dl, l] = (dl < channels).astype(np.float32)             # 0/1 -> exact in bf16

    vmem_limit = _vmem_limit_bytes()
    tile_x, tile_yc, n_yc = _pick_tiles(X, yc_pad, cpad, itemsize, int(vmem_limit * 0.75))
    n_x = pl.cdiv(X, tile_x)

    passes = 2 if out_dtype == jnp.float32 else 1
    cost = pl.CostEstimate(
        flops=int(passes * 2 * n_x * tile_x * cpad * yc_pad + 2 * X * yc_pad),
        transcendentals=int(n_yc * n_x * tile_x * cpad),
        bytes_accessed=int(itemsize * X * yc_pad + 2 * cpad * yc_pad
                           + 4 * (yc_pad + 2 * cpad)),
    )

    args = (jnp.asarray(freq_x), jnp.asarray(phase_x), jnp.asarray(emb_y),
            jnp.asarray(tmat, dtype=jnp.bfloat16))

    def run(use_buffered):
        def spec(shape, index_map, constant):
            if use_buffered and constant:
                return pl.BlockSpec(shape, index_map, pipeline_mode=pl.Buffered(1))
            return pl.BlockSpec(shape, index_map)

        in_specs = [
            spec((1, cpad), lambda j, i: (0, 0), True),               # freq_x
            spec((1, cpad), lambda j, i: (0, 0), True),               # phase_x
            spec((1, tile_yc), lambda j, i: (0, j), n_yc == 1),       # y row
            spec((cpad, tile_yc), lambda j, i: (0, j), n_yc == 1),    # selection matrix
        ]
        return pl.pallas_call(
            _penc2d_kernel,
            out_shape=jax.ShapeDtypeStruct((X, yc_pad), out_dtype),
            grid_spec=pltpu.PrefetchScalarGridSpec(
                num_scalar_prefetch=0,
                grid=(n_yc, n_x),                                     # lane-major, x-minor
                in_specs=in_specs,
                out_specs=pl.BlockSpec((tile_x, tile_yc), lambda j, i: (i, j)),
            ),
            compiler_params=pltpu.CompilerParams(
                dimension_semantics=("parallel", "parallel"),
                vmem_limit_bytes=vmem_limit,
            ),
            cost_estimate=cost,
        )(*args)

    try:
        out2d = run(True)
    except Exception:
        # Fallback for jax builds without BlockSpec(pipeline_mode=...) support.
        out2d = run(False)

    # TODO(synk): the PyTorch module's `cached_penc` host-side memoization has no
    # kernel equivalent; the encoding is recomputed on every call.
    if yc_pad != yc:
        out2d = out2d[:, :yc]
    penc = out2d.reshape(X, Y, C)                   # contiguous -> free reshape
    # TODO(synk): this broadcast mirrors the module's .repeat; consumers adding
    # the encoding to activations should fuse it rather than materialize B copies.
    return jnp.broadcast_to(penc[None], (B, X, Y, C))


def _reference(tensor):
    """Pure-numpy reproduction of the PyTorch forward, for verification."""
    B, X, Y, orig_ch = tensor.shape
    channels = int(np.ceil(orig_ch / 4) * 2)
    inv_freq = 1.0 / (10000.0 ** (np.arange(0, channels, 2, dtype=np.float32) / channels))
    pos_x = np.arange(X, dtype=np.float32)
    pos_y = np.arange(Y, dtype=np.float32)

    def get_emb(sin_inp):
        e = np.stack([np.sin(sin_inp), np.cos(sin_inp)], axis=-1)
        return e.reshape(sin_inp.shape[0], -1)

    emb_x = get_emb(np.einsum("i,j->ij", pos_x, inv_freq))[:, None, :]
    emb_y = get_emb(np.einsum("i,j->ij", pos_y, inv_freq))
    emb = np.zeros((X, Y, channels * 2), dtype=np.float32)
    emb[:, :, :channels] = emb_x
    emb[:, :, channels:2 * channels] = emb_y
    return np.broadcast_to(emb[None, :, :, :orig_ch], (B, X, Y, orig_ch)).astype(tensor.dtype)


if __name__ == "__main__":
    key = jax.random.PRNGKey(0)
    # (batch_size, x, y, ch) — only shape/dtype of `x` matter for the encoding.
    x = jax.random.normal(key, (2, 16, 16, 4), dtype=jnp.float32)

    out = positional_encoding_2d(x)
    out = jax.block_until_ready(out)

    ref = _reference(np.asarray(x))
    assert out.shape == ref.shape and out.dtype == jnp.float32
    np.testing.assert_allclose(np.asarray(out), ref, rtol=5e-5, atol=5e-5)

    print("KERNEL_OK")
</pallas_src>

<mosaic_0001>
module attributes {stable_mosaic.version = 11 : i64} {
  func.func @_penc2d_kernel(%arg0: i32, %arg1: i32, %arg2: memref<1x128xf32, #tpu.memory_space<vmem>>, %arg3: memref<1x128xf32, #tpu.memory_space<vmem>>, %arg4: memref<1x128xf32, #tpu.memory_space<vmem>>, %arg5: memref<128x128xbf16, #tpu.memory_space<vmem>>, %arg6: memref<8x128xf32, #tpu.memory_space<vmem>>) attributes {dimension_semantics = [#tpu.dimension_semantics<parallel>, #tpu.dimension_semantics<parallel>], iteration_bounds = array<i64: 1, 2>, scalar_prefetch = 0 : i64, scratch_operands = 0 : i64, tpu.core_type = #tpu.core_type<tc>, window_params = [{pipeline_mode = #tpu.pipeline_mode<synchronous>, transform_indices = @transform_0, window_bounds = array<i64: 1, 128>}, {pipeline_mode = #tpu.pipeline_mode<synchronous>, transform_indices = @transform_1, window_bounds = array<i64: 1, 128>}, {pipeline_mode = #tpu.pipeline_mode<synchronous>, transform_indices = @transform_2, window_bounds = array<i64: 1, 128>}, {pipeline_mode = #tpu.pipeline_mode<synchronous>, transform_indices = @transform_3, window_bounds = array<i64: 128, 128>}, {transform_indices = @transform_4, window_bounds = array<i64: 8, 128>}]} {
    %c8_i32 = arith.constant 8 : i32
    %0 = arith.muli %arg1, %c8_i32 : i32
    %1 = tpu.iota {dimensions = array<i32: 0>} : vector<8x128xi32>
    %2 = vector.broadcast %0 : i32 to vector<8x128xi32>
    %3 = arith.addi %2, %1 : vector<8x128xi32>
    %4 = arith.sitofp %3 : vector<8x128xi32> to vector<8x128xf32>
    %c0 = arith.constant 0 : index
    %c0_0 = arith.constant 0 : index
    %5 = vector.load %arg2[%c0, %c0_0] : memref<1x128xf32, #tpu.memory_space<vmem>>, vector<1x128xf32>
    %6 = vector.broadcast %5 : vector<1x128xf32> to vector<8x128xf32>
    %7 = arith.mulf %4, %6 : vector<8x128xf32>
    %c0_1 = arith.constant 0 : index
    %c0_2 = arith.constant 0 : index
    %8 = vector.load %arg3[%c0_1, %c0_2] : memref<1x128xf32, #tpu.memory_space<vmem>>, vector<1x128xf32>
    %9 = vector.broadcast %8 : vector<1x128xf32> to vector<8x128xf32>
    %10 = arith.addf %7, %9 : vector<8x128xf32>
    %11 = math.sin %10 : vector<8x128xf32>
    %c0_3 = arith.constant 0 : index
    %c0_4 = arith.constant 0 : index
    %12 = vector.load %arg5[%c0_3, %c0_4] : memref<128x128xbf16, #tpu.memory_space<vmem>>, vector<128x128xbf16>
    %13 = arith.truncf %11 : vector<8x128xf32> to vector<8x128xbf16>
    %cst = arith.constant dense<0.000000e+00> : vector<8x128xf32>
    %14 = tpu.matmul %13, %12, %cst {dimension_numbers = #tpu.dot_dimension_numbers<[1], [0], [0], [1], [0, 0, 1, 1], [], []>} : vector<8x128xbf16>, vector<128x128xbf16>, vector<8x128xf32> -> vector<8x128xf32>
    %15 = arith.extf %13 : vector<8x128xbf16> to vector<8x128xf32>
    %16 = arith.subf %11, %15 : vector<8x128xf32>
    %17 = arith.truncf %16 : vector<8x128xf32> to vector<8x128xbf16>
    %cst_5 = arith.constant dense<0.000000e+00> : vector<8x128xf32>
    %18 = tpu.matmul %17, %12, %cst_5 {dimension_numbers = #tpu.dot_dimension_numbers<[1], [0], [0], [1], [0, 0, 1, 1], [], []>} : vector<8x128xbf16>, vector<128x128xbf16>, vector<8x128xf32> -> vector<8x128xf32>
    %19 = arith.addf %14, %18 : vector<8x128xf32>
    %c0_6 = arith.constant 0 : index
    %c0_7 = arith.constant 0 : index
    %20 = vector.load %arg4[%c0_6, %c0_7] : memref<1x128xf32, #tpu.memory_space<vmem>>, vector<1x128xf32>
    %21 = vector.broadcast %20 : vector<1x128xf32> to vector<8x128xf32>
    %22 = arith.addf %19, %21 : vector<8x128xf32>
    %c0_8 = arith.constant 0 : index
    %c0_9 = arith.constant 0 : index
    %23 = vector.load %arg6[%c0_8, %c0_9] : memref<8x128xf32, #tpu.memory_space<vmem>>, vector<8x128xf32>
    tpu.vector_store %arg6[%c0_8, %c0_9], %22 {strides = array<i32>} : memref<8x128xf32, #tpu.memory_space<vmem>>, vector<8x128xf32>,
    return
  }
  func.func @transform_0(%arg0: i32, %arg1: i32) -> (i32, i32) {
    %c0_i32 = arith.constant 0 : i32
    %c0_i32_0 = arith.constant 0 : i32
    %c0_i32_1 = arith.constant 0 : i32
    return %c0_i32, %c0_i32_0 : i32, i32
  }
  func.func @transform_1(%arg0: i32, %arg1: i32) -> (i32, i32) {
    %c0_i32 = arith.constant 0 : i32
    %c0_i32_0 = arith.constant 0 : i32
    %c0_i32_1 = arith.constant 0 : i32
    return %c0_i32, %c0_i32_0 : i32, i32
  }
  func.func @transform_2(%arg0: i32, %arg1: i32) -> (i32, i32) {
    %c0_i32 = arith.constant 0 : i32
    %c0_i32_0 = arith.constant 0 : i32
    return %c0_i32, %arg0 : i32, i32
  }
  func.func @transform_3(%arg0: i32, %arg1: i32) -> (i32, i32) {
    %c0_i32 = arith.constant 0 : i32
    %c0_i32_0 = arith.constant 0 : i32
    return %c0_i32, %arg0 : i32, i32
  }
  func.func @transform_4(%arg0: i32, %arg1: i32) -> (i32, i32) {
    %c0_i32 = arith.constant 0 : i32
    return %arg1, %arg0 : i32, i32
  }
}

module attributes {stable_mosaic.version = 11 : i64} {
  func.func @_penc2d_kernel(%arg0: i32, %arg1: i32, %arg2: memref<1x128xf32, #tpu.memory_space<vmem>>, %arg3: memref<1x128xf32, #tpu.memory_space<vmem>>, %arg4: memref<1x128xf32, #tpu.memory_space<vmem>>, %arg5: memref<128x128xbf16, #tpu.memory_space<vmem>>, %arg6: memref<8x128xf32, #tpu.memory_space<vmem>>) attributes {dimension_semantics = [#tpu.dimension_semantics<parallel>, #tpu.dimension_semantics<parallel>], iteration_bounds = array<i64: 1, 2>, scalar_prefetch = 0 : i64, scratch_operands = 0 : i64, tpu.core_type = #tpu.core_type<tc>, window_params = [{pipeline_mode = #tpu.pipeline_mode<synchronous>, transform_indices = @transform_0, window_bounds = array<i64: 1, 128>}, {pipeline_mode = #tpu.pipeline_mode<synchronous>, transform_indices = @transform_1, window_bounds = array<i64: 1, 128>}, {transform_indices = @transform_2, window_bounds = array<i64: 1, 128>}, {transform_indices = @transform_3, window_bounds = array<i64: 128, 128>}, {transform_indices = @transform_4, window_bounds = array<i64: 8, 128>}]} {
    %c8_i32 = arith.constant 8 : i32
    %0 = arith.muli %arg1, %c8_i32 : i32
    %1 = tpu.iota {dimensions = array<i32: 0>} : vector<8x128xi32>
    %2 = vector.broadcast %0 : i32 to vector<8x128xi32>
    %3 = arith.addi %2, %1 : vector<8x128xi32>
    %4 = arith.sitofp %3 : vector<8x128xi32> to vector<8x128xf32>
    %c0 = arith.constant 0 : index
    %c0_0 = arith.constant 0 : index
    %5 = vector.load %arg2[%c0, %c0_0] : memref<1x128xf32, #tpu.memory_space<vmem>>, vector<1x128xf32>
    %6 = vector.broadcast %5 : vector<1x128xf32> to vector<8x128xf32>
    %7 = arith.mulf %4, %6 : vector<8x128xf32>
    %c0_1 = arith.constant 0 : index
    %c0_2 = arith.constant 0 : index
    %8 = vector.load %arg3[%c0_1, %c0_2] : memref<1x128xf32, #tpu.memory_space<vmem>>, vector<1x128xf32>
    %9 = vector.broadcast %8 : vector<1x128xf32> to vector<8x128xf32>
    %10 = arith.addf %7, %9 : vector<8x128xf32>
    %11 = math.sin %10 : vector<8x128xf32>
    %c0_3 = arith.constant 0 : index
    %c0_4 = arith.constant 0 : index
    %12 = vector.load %arg5[%c0_3, %c0_4] : memref<128x128xbf16, #tpu.memory_space<vmem>>, vector<128x128xbf16>
    %13 = arith.truncf %11 : vector<8x128xf32> to vector<8x128xbf16>
    %cst = arith.constant dense<0.000000e+00> : vector<8x128xf32>
    %14 = tpu.matmul %13, %12, %cst {dimension_numbers = #tpu.dot_dimension_numbers<[1], [0], [0], [1], [0, 0, 1, 1], [], []>} : vector<8x128xbf16>, vector<128x128xbf16>, vector<8x128xf32> -> vector<8x128xf32>
    %15 = arith.extf %13 : vector<8x128xbf16> to vector<8x128xf32>
    %16 = arith.subf %11, %15 : vector<8x128xf32>
    %17 = arith.truncf %16 : vector<8x128xf32> to vector<8x128xbf16>
    %cst_5 = arith.constant dense<0.000000e+00> : vector<8x128xf32>
    %18 = tpu.matmul %17, %12, %cst_5 {dimension_numbers = #tpu.dot_dimension_numbers<[1], [0], [0], [1], [0, 0, 1, 1], [], []>} : vector<8x128xbf16>, vector<128x128xbf16>, vector<8x128xf32> -> vector<8x128xf32>
    %19 = arith.addf %14, %18 : vector<8x128xf32>
    %c0_6 = arith.constant 0 : index
    %c0_7 = arith.constant 0 : index
    %20 = vector.load %arg4[%c0_6, %c0_7] : memref<1x128xf32, #tpu.memory_space<vmem>>, vector<1x128xf32>
    %21 = vector.broadcast %20 : vector<1x128xf32> to vector<8x128xf32>
    %22 = arith.addf %19, %21 : vector<8x128xf32>
    %c0_8 = arith.constant 0 : index
    %c0_9 = arith.constant 0 : index
    %23 = vector.load %arg6[%c0_8, %c0_9] : memref<8x128xf32, #tpu.memory_space<vmem>>, vector<8x128xf32>
    tpu.vector_store %arg6[%c0_8, %c0_9], %22 {strides = array<i32>} : memref<8x128xf32, #tpu.memory_space<vmem>>, vector<8x128xf32>,
    return
  }
  func.func @transform_0(%arg0: i32, %arg1: i32) -> (i32, i32) {
    %c0_i32 = arith.constant 0 : i32
    %c0_i32_0 = arith.constant 0 : i32
    %c0_i32_1 = arith.constant 0 : i32
    return %c0_i32, %c0_i32_0 : i32, i32
  }
  func.func @transform_1(%arg0: i32, %arg1: i32) -> (i32, i32) {
    %c0_i32 = arith.constant 0 : i32
    %c0_i32_0 = arith.constant 0 : i32
    %c0_i32_1 = arith.constant 0 : i32
    return %c0_i32, %c0_i32_0 : i32, i32
  }
  func.func @transform_2(%arg0: i32, %arg1: i32) -> (i32, i32) {
    %c0_i32 = arith.constant 0 : i32
    %c0_i32_0 = arith.constant 0 : i32
    return %c0_i32, %arg0 : i32, i32
  }
  func.func @transform_3(%arg0: i32, %arg1: i32) -> (i32, i32) {
    %c0_i32 = arith.constant 0 : i32
    %c0_i32_0 = arith.constant 0 : i32
    return %c0_i32, %arg0 : i32, i32
  }
  func.func @transform_4(%arg0: i32, %arg1: i32) -> (i32, i32) {
    %c0_i32 = arith.constant 0 : i32
    return %arg1, %arg0 : i32, i32
  }
}

</mosaic_0001>

<bundles_post_ra>
// kernel: tpu_custom_call.1
= control target key start
LH: loop header
LB: loop body
LE: loop exit
PB: predicated region body
PF: predicated region fallthrough
CT: control target
= control target key end

     0   :  { %9 = vsyncpa [#allocation3], 0  ;;  %s1233_s0 = inlined_call_operand.hbm [shape: f32[1,128], index: 0, kind: input, shape index: {}]   ;;  %s1234_s1 = inlined_call_operand.vmem [shape: f32[1,128], index: 1, kind: input, shape index: {}]   ;;  %s1235_s2 = inlined_call_operand.vmem [shape: f32[1,128], index: 2, kind: input, shape index: {}]   ;;  %s1236_s3 = inlined_call_operand.hbm [shape: bf16[128,128], index: 3, kind: input, shape index: {}]   ;;  %s1237_s4 = inlined_call_operand.hbm [shape: f32[16,128], index: 4, kind: output, shape index: {}]  }
   0x1   :  { %10 = vsyncpa [#allocation6], 0 }
   0x2   :  { %11 = vsyncpa [#allocation4], 0 }
   0x3   :  { %13 = vsyncpa [#allocation4 + $0x1], 0  ;;  %s1002_s15 = smov 0   ;;  %s1004_s16 = smov 0  }
   0x4   :  { %s1006_s17 = smov 0   ;;  %s1008_s18 = smov 0  }
   0x5   :  { %s1010_s19 = smov 0   ;;  %s1012_s20 = smov 0  }
   0x6 LB: > { %s630_s21 = sadd.s32 4294967295, %s962_s20   ;;  %s631_s22 = sadd.s32 4294967294, %s962_s20   ;;  %s962_s20 = sphi %s1012_s20, %s19_s20   ;;  %s958_s19 = sphi %s1010_s19, %s1255_s19   ;;  %s954_s18 = sphi %s1008_s18, %s1254_s18   ;;  %s950_s17 = sphi %s1006_s17, %s1253_s17   ;;  %s946_s16 = sphi %s1004_s16, %s1252_s16   ;;  %s942_s15 = sphi %s1002_s15, %s1251_s15  }
   0x7   : > { %s28_s23 = sadd.s32 1, %s958_s19  ;;  %s134_s24 = sadd.s32 1, %s950_s17 }
   0x8   : > { %p29_p0 = scmp.ge.s32.totalorder %s28_s23, 2  ;;  %p144_p1 = scmp.ne.s32.totalorder %s950_s17, %s946_s16 }
   0x9   : > { %p145_p2 = scmp.eq.s32.totalorder %s630_s21, 1  ;;  %p150_p3 = scmp.ne.s32.totalorder %s946_s16, %s942_s15 }
   0xa   : > { %s1257_s23 = smov (%p29_p0, %s28_s23), 0  ;;  %p151_p5 = scmp.eq.s32.totalorder %s631_s22, 1 }
   0xb   : > { %p1042_p4 = por %p145_p2, %p144_p1  ;;  %s129_s26 = ssub.s32 %s958_s19, %s1257_s23 }
   0xc   : > { %p632_p6 = scmp.ge.s32.totalorder %s962_s20, 1  ;;  %p132_p7 = scmp.eq.s32.totalorder %s129_s26, 0 }
   0xd   : > { %s1242_s25 = scalar_select %p1042_p4, 1, 0 }
   0xe   : > { %p1049_p8 = por %p151_p5, %p150_p3  ;;  %p158_p9 = scmp.lt.s32.totalorder %s962_s20, 3 }
   0xf   : > { %s1055_s28 = scalar_select %p132_p7, %s950_s17, %s134_s24  }
  0x10   : > { %s1243_s27 = scalar_select %p1049_p8, 1, 0 }
  0x11   : > { %p1057_p10 = pnand %p632_p6, %p158_p9  ;;  %p1061_p11 = scmp.eq.s32.totalorder %s630_s21, 0 }
  0x12   : > { %s964_s5 = smov [#allocation2]   ;;  %s965_s7 = smov [#allocation5]  }
  0x13   : > { %s1244_s29 = scalar_select %p1057_p10, 1, 0 }
  0x14   : > { %s1245_s30 = scalar_select %p1061_p11, 1, 0 }
  0x15   : > { %p732_p12 = pneg %p1057_p10  ;;  %s171_s6 = sshll.u32 %s964_s5, 4  ;;  %s172_s6 = int_to_ptr.vmem [resolvable:$true] %s171_s6 }
  0x16   : > { %s192_s8 = sshll.u32 %s965_s7, 4  ;;  %s820_s12 = scalar_lea.hbm %s1233_s0, 16  ;;  %s1073_s8 = int_to_ptr.vmem [resolvable:$true] %s192_s8 }
  0x17   : > { %p1069_p13 = pnand %p1061_p11, %p732_p12  ;;  %p821_p0 = scmp.ne.s32.totalorder %s1233_s0, %s820_s12 }
  0x18   : > { %p827_p5 = scmp.lt.u32.totalorder %s820_s12, %s1233_s0 }
  0x19   : > { %p822_p1 = pneg %p1069_p13 }
  0x1b   : > { %p823_p2 = pnand %p822_p1, %p821_p0 }
  0x1d   : > { %p824_p3 = pneg %p823_p2 }
  0x1f   : > { %p829_p6 = pnand %p827_p5, %p824_p3 }
  0x21   : > { %832 = shalt.err (!%p829_p6)
}
  0x22   : > { %s833_s24 = scalar_lea.vmem %s172_s6, 16  ;;  %s840_s26 = scalar_lea.vmem %s172_s6, 32 }
  0x23   : > { %p834_p7 = scmp.ne.s32.totalorder %s172_s6, %s833_s24  ;;  %p841_p8 = scmp.lt.s32.totalorder %s172_s6, %s172_s6 }
  0x24   : > { %p842_p4 = scmp.lt.s32.totalorder %s840_s26, %s833_s24 }
  0x25   : > { %p836_p9 = pnand %p834_p7, %p822_p1 }
  0x26   : > { %p843_p11 = por %p842_p4, %p841_p8 }
  0x27   : > { %p837_p12 = pneg %p836_p9 }
  0x29   : > { %p844_p10 = pnand %p843_p11, %p837_p12 }
  0x2b   : > { %847 = shalt.err (!%p844_p10)
}
  0x2c   : > { %735 = dma.hbm_to_vmem [thread:$0]  (!%p1069_p13), %s1233_s0, 16, %s172_s6, [#allocation3]  }
  0x2d   : > { %s848_s12 = scalar_lea.hbm %s1236_s3, 1024 }
  0x2e   : > { %p849_p0 = scmp.ne.s32.totalorder %s1236_s3, %s848_s12  ;;  %p855_p10 = scmp.lt.u32.totalorder %s848_s12, %s1236_s3 }
  0x30   : > { %p851_p4 = pnand %p849_p0, %p822_p1 }
  0x32   : > { %p852_p8 = pneg %p851_p4 }
  0x34   : > { %p857_p11 = pnand %p855_p10, %p852_p8 }
  0x36   : > { %860 = shalt.err (!%p857_p11)
}
  0x37   : > { %s861_s6 = scalar_lea.vmem %s1073_s8, 1024  ;;  %p869_p6 = scmp.lt.s32.totalorder %s1073_s8, %s1073_s8 }
  0x38   : > { %p862_p2 = scmp.ne.s32.totalorder %s1073_s8, %s861_s6  ;;  %p870_p7 = scmp.lt.s32.totalorder %s861_s6, %s861_s6 }
  0x3a   : > { %p864_p3 = pnand %p862_p2, %p822_p1  ;;  %p871_p9 = por %p870_p7, %p869_p6 }
  0x3c   : > { %p865_p5 = pneg %p864_p3 }
  0x3e   : > { %p872_p12 = pnand %p871_p9, %p865_p5 }
  0x40   : > { %875 = shalt.err (!%p872_p12)
}
  0x41   : > { %s966_s24 = smov 64   ;;  %s967_s26 = smov 4  }
  0x42   : > { %738 = dma.hbm_to_vmem [thread:$0]  (!%p1069_p13), %s1236_s3, 1024, %s1073_s8, [#allocation6], %s966_s24, %s966_s24, %s967_s26  }
  0x43   : > { %p1247_p0 = scmp.ne.s32.totalorder %s1244_s29, 0 }
  0x44   : > { %p1248_p1 = scmp.ne.s32.totalorder (!%p1247_p0), %s1245_s30, 0 }
  0x45   : > { %208 = sbr.rel (%p1247_p0) target bundleno = 409 (0x199), region = 36 }
  0x4c   : > { %929 = dma.done.wait (%p1248_p1), [#allocation3], 16  }
  0x4d   : > { %931 = vsyncadd (%p1248_p1), [#allocation3], 4294967280 }
  0x4e   : > { %933 = dma.done.wait (%p1248_p1), [#allocation6], 1024  }
  0x4f   : > { %935 = vsyncadd (%p1248_p1), [#allocation6], 4294966272  ;;  %v241_v0 = vlaneseq  ;;  %v968_v1 = vmov 0.0   ;;  %vm969_vm0 = vmmov 0   ;;  %s640_s29 = sshll.u32 %s954_s18, 3  ;;  %v808_v4 = vld [vmem:[#allocation5] sm:$0xff]  }
  0x50   : > { %698 = vmatprep.subr.bf16.mxu1 %v968_v1  ;;  %678 = vmatprep.subr.bf16.mxu0 %v968_v1  ;;  %v243_v3 = vstv %s640_s29  ;;  %v809_v6 = vld [vmem:[#allocation5 + $0x8] sm:$0xff]   ;;  %v810_v8 = vld [vmem:[#allocation5 + $0x10] sm:$0xff]   ;;  %v641_v9 = vld [vmem:[#allocation2] ss:$0 sm:$0xff]  ;;  %v970_v27 = vmov 683565275  }
  0x51   : > { %714 = vmatprep.mubr.msk.bf16.mxu1 %vm969_vm0, %v968_v1  ;;  %694 = vmatprep.mubr.msk.bf16.mxu0 %vm969_vm0, %v968_v1  ;;  %v242_v2 = vshrl.u32 %v241_v0, 7  ;;  %v642_v10 = vld [vmem:[%s1234_s1] ss:$0 sm:$0xff]  ;;  %v812_v15 = vld [vmem:[#allocation5 + $0x20] sm:$0xff]   ;;  %v813_v18 = vld [vmem:[#allocation5 + $0x28] sm:$0xff]   ;;  %s233_s9 = sand.u32 1, %s946_s16  }
  0x52   : > { %699 = vmatpush3.bf16.msra.mxu1 %v808_v4  ;;  %679 = vmatpush3.bf16.msra.mxu0 %v808_v4  ;;  %v811_v12 = vld [vmem:[#allocation5 + $0x18] sm:$0xff]   ;;  %v814_v21 = vld [vmem:[#allocation5 + $0x30] sm:$0xff]   ;;  %v971_v29 = vmov 2475754826   ;;  %v972_v32 = vmov 2131351028  }
  0x53   : > { %v244_v5 = vadd.s32 %v243_v3, %v242_v2  ;;  %700 = vmatprep.subr.bf16.mxu1 %v968_v1  ;;  %680 = vmatprep.subr.bf16.mxu0 %v968_v1  ;;  %v815_v31 = vld [vmem:[#allocation5 + $0x38] sm:$0xff]   ;;  %v973_v34 = vmov 2102212464   ;;  %v974_v36 = vmov 920167782   ;;  %s639_s10 = sshll.u32 %s233_s9, 3 }
  0x54   : > { %v975_v44 = vmov 1326507024   ;;  %s657_s13 = sshll.u32 %s954_s18, 7  ;;  %s235_s14 = scalar_lea.vmem [#allocation7], %s639_s10 }
  0x55   : > { %v245_v7 = vcvt.s32.f32 %v244_v5  ;;  %s538_s21 = sshll.u32 %s235_s14, 4  ;;  %s1186_s24 = scalar_lea.hbm %s1237_s4, %s657_s13  ;;  %s1188_s21 = int_to_ptr.vmem [resolvable:$true] %s538_s21 }
  0x56   : > { %701 = vmatpush3.bf16.msra.mxu1 %v809_v6  ;;  %681 = vmatpush3.bf16.msra.mxu0 %v809_v6  ;;  %s524_s26 = scalar_lea.sflag [#allocation4], %s233_s9  ;;  %s876_s18 = scalar_lea.vmem %s1188_s21, 128 }
  0x57   : > { %702 = vmatprep.subr.bf16.mxu1 %v968_v1  ;;  %682 = vmatprep.subr.bf16.mxu0 %v968_v1  ;;  %v253_v11 = vmul.f32 %v641_v9, %v245_v7  ;;  %p877_p13 = scmp.ne.s32.totalorder %s1188_s21, %s876_s18  ;;  %p1249_p4 = scmp.ne.s32.totalorder %s1242_s25, 0 }
  0x58   : > { %s976_s5 = smov [#allocation7]  }
  0x59   : > { %v1146_v13 = vadd.f32 %v642_v10, %v253_v11  ;;  %p878_p8 = pnand %p877_p13, %p1249_p4  ;;  %s880_s7 = sshll.u32 %s976_s5, 4  ;;  %s881_s7 = int_to_ptr.vmem [resolvable:$false] %s880_s7 }
  0x5a   : > { %703 = vmatpush3.bf16.msra.mxu1 %v810_v8  ;;  %683 = vmatpush3.bf16.msra.mxu0 %v810_v8  ;;  %s882_s29 = scalar_lea.vmem %s881_s7, 256  ;;  %p883_p11 = scmp.lt.s32.totalorder %s1188_s21, %s881_s7 }
  0x5b   : > { %704 = vmatprep.subr.bf16.mxu1 %v968_v1  ;;  %684 = vmatprep.subr.bf16.mxu0 %v968_v1  ;;  %v265_v14 = vand.u32 2139095040, %v1146_v13  ;;  %v262_v19 = vand.u32 2147483647, %v1146_v13  ;;  %vm264_vm8 = vcmp.lt.s32.totalorder %v1146_v13, 0  ;;  %vm354_vm13 = vweird.f32 %v1146_v13  ;;  %p879_p10 = pneg %p878_p8  ;;  %p884_p2 = scmp.lt.s32.totalorder %s882_s29, %s876_s18 }
  0x5d   : > { %v266_v16 = vshrl.u32 %v265_v14, 23  ;;  %v269_v23 = vand.u32 8388607, %v262_v19  ;;  %vm263_vm9 = vcmp.le.f32.partialorder %v262_v19, 0.7853982  ;;  %p885_p3 = por %p884_p2, %p883_p11 }
  0x5e   : > { %705 = vmatpush3.bf16.msra.mxu1 %v811_v12  ;;  %685 = vmatpush3.bf16.msra.mxu0 %v811_v12 }
  0x5f   : > { %706 = vmatprep.subr.bf16.mxu1 %v968_v1  ;;  %686 = vmatprep.subr.bf16.mxu0 %v968_v1  ;;  %v643_v17 = vadd.s32 4294967169, %v266_v16  ;;  %v270_v38 = vor.u32 8388608, %v269_v23  ;;  %p886_p5 = pnand %p885_p3, %p879_p10 }
  0x61   : > { %v272_v20 = vadd.s32 1, %v643_v17  ;;  %v310_v53 = vshll.u32 %v270_v38, 8 }
  0x62   : > { %707 = vmatpush3.bf16.msra.mxu1 %v812_v15  ;;  %687 = vmatpush3.bf16.msra.mxu0 %v812_v15 }
  0x63   : > { %708 = vmatprep.subr.bf16.mxu1 %v968_v1  ;;  %688 = vmatprep.subr.bf16.mxu0 %v968_v1  ;;  %vm273_vm1 = vcmp.gt.s32.totalorder %v272_v20, 0 }
  0x64   : > { %v274_v22 = vsel %vm273_vm1, %v272_v20, 0 }
  0x65   : > { %v276_v24 = vand.u32 31, %v274_v22  ;;  %v275_v25 = vshrl.u32 %v274_v22, 5 }
  0x66   : > { %709 = vmatpush3.bf16.msra.mxu1 %v813_v18  ;;  %689 = vmatpush3.bf16.msra.mxu0 %v813_v18 }
  0x67   : > { %710 = vmatprep.subr.bf16.mxu1 %v968_v1  ;;  %690 = vmatprep.subr.bf16.mxu0 %v968_v1  ;;  %v277_v26 = vsub.s32 32, %v276_v24  ;;  %v279_v28 = vshll.u32 %v970_v27, %v276_v24  ;;  %v282_v30 = vshll.u32 %v971_v29, %v276_v24  ;;  %v285_v33 = vshll.u32 %v972_v32, %v276_v24 }
  0x68   : > { %v288_v35 = vshll.u32 %v973_v34, %v276_v24  ;;  %v291_v37 = vshll.u32 %v974_v36, %v276_v24  ;;  %vm294_vm2 = vcmp.lt.s32.totalorder %v275_v25, 1  ;;  %vm297_vm3 = vcmp.lt.s32.totalorder %v275_v25, 4 }
  0x69   : > { %v278_v39 = vshrl.u32 %v970_v27, %v277_v26  ;;  %v280_v40 = vshrl.u32 %v971_v29, %v277_v26  ;;  %v283_v41 = vshrl.u32 %v972_v32, %v277_v26  ;;  %v286_v42 = vshrl.u32 %v973_v34, %v277_v26 }
  0x6a   : > { %711 = vmatpush3.bf16.msra.mxu1 %v814_v21  ;;  %691 = vmatpush3.bf16.msra.mxu0 %v814_v21  ;;  %v289_v43 = vshrl.u32 %v974_v36, %v277_v26  ;;  %v292_v45 = vshrl.u32 %v975_v44, %v277_v26  ;;  %vm296_vm4 = vcmp.lt.s32.totalorder %v275_v25, 3  ;;  %vm295_vm5 = vcmp.lt.s32.totalorder %v275_v25, 2 }
  0x6b   : > { %712 = vmatprep.subr.bf16.mxu1 %v968_v1  ;;  %692 = vmatprep.subr.bf16.mxu0 %v968_v1  ;;  %v281_v46 = vor.u32 %v280_v40, %v279_v28  ;;  %v284_v47 = vor.u32 %v283_v41, %v282_v30  ;;  %v287_v48 = vor.u32 %v286_v42, %v285_v33 }
  0x6c   : > { %v290_v49 = vor.u32 %v289_v43, %v288_v35  ;;  %v293_v50 = vor.u32 %v292_v45, %v291_v37 }
  0x6d   : > { %v298_v51 = vsel %vm294_vm2, %v278_v39, %v281_v46  ;;  %v302_v52 = vsel %vm294_vm2, %v281_v46, %v284_v47  ;;  %v299_v54 = vsel %vm297_vm3, %v287_v48, 2102212464  ;;  %v306_v56 = vsel %vm294_vm2, %v284_v47, %v287_v48 }
  0x6e   : > { %713 = vmatpush3.bf16.msra.mxu1 %v815_v31  ;;  %693 = vmatpush3.bf16.msra.mxu0 %v815_v31  ;;  %v303_v55 = vsel %vm297_vm3, %v290_v49, 920167782  ;;  %v307_v57 = vsel %vm297_vm3, %v293_v50, 1326507024  ;;  %v300_v58 = vsel %vm296_vm4, %v284_v47, %v299_v54 }
  0x6f   : > { %v304_v59 = vsel %vm296_vm4, %v287_v48, %v303_v55  ;;  %v308_v60 = vsel %vm296_vm4, %v290_v49, %v307_v57  ;;  %v301_v61 = vsel %vm295_vm5, %v298_v51, %v300_v58 }
  0x70   : > { %v305_v62 = vsel %vm295_vm5, %v302_v52, %v304_v59  ;;  %v309_v63 = vsel %vm295_vm5, %v306_v56, %v308_v60  ;;  %v317_v4 = vmul.u32 %v310_v53, %v301_v61 }
  0x71   : > { %v1163_v0 = vmul.u32.u64.low %v310_v53, %v309_v63  ;;  %v1164_v1 = vmul.u32.u64.high %v310_v53, %v309_v63, %v1163_v0  ;;  %v1166_v2 = vmul.u32.u64.low %v310_v53, %v305_v62  ;;  %v1167_v3 = vmul.u32.u64.high %v310_v53, %v305_v62, %v1166_v2 }
  0x73   : > { %vm319_vm6 = vc.u32 %v1164_v1, %v1166_v2  ;;  %v320_v5 = vadd.s32 1, %v1167_v3  ;;  %v318_v17 = vadd.s32 %v1166_v2, %v1164_v1 }
  0x75   : > { %v321_v6 = vsel %vm319_vm6, %v320_v5, %v1167_v3 }
  0x76   : > { %v322_v7 = vadd.s32 %v321_v6, %v317_v4 }
  0x78   : > { %v323_v8 = vadd.s32 536870912, %v322_v7 }
  0x7a   : > { %v324_v9 = vshrl.u32 %v323_v8, 30 }
  0x7c   : > { %v325_v10 = vshll.u32 %v324_v9, 30  ;;  %v348_v30 = vsub.s32 4, %v324_v9 }
  0x7e   : > { %v326_v11 = vsub.s32 %v322_v7, %v325_v10  ;;  %v349_v33 = vsel %vm264_vm8, %v348_v30, %v324_v9 }
  0x7f   : > { %v351_v36 = vsel %vm263_vm9, 0, %v349_v33 }
  0x80   : > { %v328_v12 = vsub.s32 0, %v326_v11  ;;  %v355_v37 = vadd.s32 3, %v351_v36 }
  0x82   : > { %v644_v14 = vmin.u32 %v328_v12, %v326_v11  ;;  %v356_v38 = vand.u32 3, %v355_v37 }
  0x84   : > { %v330_v15 = vclz %v644_v14  ;;  %vm361_vm10 = vcmp.eq.s32.totalorder %v356_v38, 2  ;;  %vm358_vm11 = vcmp.eq.s32.totalorder %v356_v38, 0  ;;  %vm357_vm12 = vcmp.lt.s32.totalorder %v356_v38, 2 }
  0x86   : > { %v645_v16 = vadd.s32 4294967294, %v330_v15 }
  0x88   : > { %vm646_vm7 = vcmp.lt.s32.totalorder %v645_v16, 0 }
  0x89   : > { %v333_v18 = vsel %vm646_vm7, 0, %v645_v16 }
  0x8a   : > { %v334_v20 = vsub.s32 32, %v333_v18  ;;  %v335_v21 = vshll.u32 %v326_v11, %v333_v18  ;;  %v338_v22 = vsub.s32 4294967266, %v333_v18 }
  0x8c   : > { %v336_v23 = vshrl.u32 %v318_v17, %v334_v20  ;;  %v339_v24 = vadd.s32 127, %v338_v22 }
  0x8e   : > { %v337_v25 = vor.u32 %v336_v23, %v335_v21  ;;  %v340_v26 = vshll.u32 %v339_v24, 23 }
  0x90   : > { %v341_v27 = vor.u32 4788187, %v340_v26  ;;  %v344_v28 = vcvt.s32.f32 %v337_v25 }
  0x92   : > { %v342_v29 = vand.u32 2147483647, %v341_v27 }
  0x94   : > { %v345_v31 = vmul.f32 %v344_v28, %v342_v29 }
  0x96   : > { %v346_v32 = vxor.u32 2147483648, %v345_v31 }
  0x98   : > { %v347_v34 = vsel %vm264_vm8, %v346_v32, %v345_v31 }
  0x99   : > { %v350_v35 = vsel %vm263_vm9, %v1146_v13, %v347_v34  ;;  %v655_v13 = vld [vmem:[%s1235_s2] ss:$0 sm:$0xff] }
  0x9a   : > { %816 = vcosq.f32 %v350_v35 }
  0x9b   : > { %818 = vsinq.f32 %v350_v35 }
  0xa4   : > { %v817_v39 = vpop.eup %816 }
  0xa5   : > { %v819_v40 = vpop.eup %818  ;;  %v362_v41 = vxor.u32 2147483648, %v817_v39 }
  0xa6   : > { %v359_v42 = vxor.u32 2147483648, %v819_v40 }
  0xa7   : > { %v363_v19 = vsel %vm361_vm10, %v362_v41, %v819_v40 }
  0xa8   : > { %v360_v43 = vsel %vm358_vm11, %v817_v39, %v359_v42 }
  0xa9   : > { %v364_v44 = vsel %vm357_vm12, %v360_v43, %v363_v19 }
  0xaa   : > { %v365_v45 = vsel %vm354_vm13, nan, %v364_v44 }
  0xab   : > { %v382_v46 = vpack.c.bf16 %v365_v45, %v365_v45 }
  0xad   : > { %v383_v47 = vunpack.c.l.bf16 %v382_v46  ;;  %715 = vmatmul.mubr.bf16.vlgmr.msra.gmra.mrb[0].mxu1 %v382_v46 }
  0xaf   : > { %v384_v48 = vsub.f32 %v365_v45, %v383_v47 }
  0xb1   : > { %v385_v49 = vpack.c.bf16 %v384_v48, %v384_v48 }
  0xb3   : > { %695 = vmatmul.mubr.bf16.vlgmr.msra.gmra.mrb[0].mxu0 %v385_v49 }
 0x180   : > { %v508_v50 = vpop.f32.mrb[0].mxu1 }
 0x181   : > { %v716_v51 = vpop.f32.mrb[1].mxu1 }
 0x182   : > { %v511_v52 = vpop.f32.mrb[2].mxu1 }
 0x183   : > { %v717_v53 = vpop.f32.mrb[3].mxu1 }
 0x186   : > { %v468_v54 = vpop.f32.mrb[0].mxu0 }
 0x187   : > { %v509_v55 = vadd.f32 %v508_v50, %v468_v54  ;;  %v696_v56 = vpop.f32.mrb[1].mxu0 }
 0x188   : > { %v471_v57 = vpop.f32.mrb[2].mxu0 }
 0x189   : > { %v521_v58 = vadd.f32 %v655_v13, %v509_v55  ;;  %v697_v59 = vpop.f32.mrb[3].mxu0 }
 0x18b   : > { %522 = vst [vmem:[%s235_s14] sm:$0xff] %v521_v58 }
 0x18c   : > { %889 = shalt.err (!%p886_p5)
}
 0x18d   : > { %s890_s30 = scalar_lea.hbm %s1186_s24, 128  ;;  %s894_s10 = scalar_lea.hbm %s1237_s4, 256 }
 0x18e   : > { %p891_p6 = scmp.ne.s32.totalorder %s1186_s24, %s890_s30  ;;  %p895_p12 = scmp.lt.u32.totalorder %s1186_s24, %s1237_s4 }
 0x18f   : > { %p896_p0 = scmp.lt.u32.totalorder %s894_s10, %s890_s30  ;;  %p898_p13 = scmp.lt.u32.totalorder %s890_s30, %s1186_s24 }
 0x190   : > { %p892_p7 = pnand %p891_p6, %p1249_p4 }
 0x191   : > { %p897_p1 = por %p896_p0, %p895_p12 }
 0x192   : > { %p893_p9 = pneg %p892_p7 }
 0x193   : > { %p899_p8 = por %p898_p13, %p897_p1 }
 0x195   : > { %p900_p10 = pnand %p899_p8, %p893_p9 }
 0x197   : > { %903 = shalt.err (!%p900_p10)
}
 0x198   : > { %730 = dma.vmem_to_hbm [thread:$0]  (%p1249_p4), %s1188_s21, 128, %s1186_s24, %s524_s26  }
 0x199 PF: > { %p747_p11 = scmp.ge.s32.totalorder %s962_s20, 2  ;;  %s550_s13 = sand.u32 1, %s942_s15  }
 0x19a   : > { %p1250_p2 = scmp.ne.s32.totalorder %s1243_s27, 0  ;;  %s551_s14 = scalar_lea.sflag [#allocation4], %s550_s13 }
 0x19c   : > { %p740_p3 = pnand %p747_p11, %p1250_p2 }
 0x19e   : > { %937 = dma.done.wait (!%p740_p3), %s551_s14, 128  }
 0x19f   : > { %939 = vsyncadd (!%p740_p3), %s551_s14, 4294967168  ;;  %s19_s20 = sadd.s32 1, %s962_s20   ;;  %s1251_s15 = smov %s946_s16 }
 0x1a0   : > { %p16_p5 = scmp.ge.s32.totalorder %s19_s20, 4   ;;  %s1252_s16 = smov %s950_s17 }
 0x1a1   : > { %s1253_s17 = smov %s1055_s28  ;;  %s1254_s18 = smov %s958_s19 }
 0x1a2   : > { %s1255_s19 = smov %s1257_s23  ;;  %18 = sbr.rel (!%p16_p5) target bundleno = 6 (0x6), region = 81 }
 0x1a9   :  { %556 = vsyncpa [#allocation3], 1 }
 0x1aa   :  { %558 = vsyncpa [#allocation3 + $0x1], 1 }
 0x1ab   :  { %559 = vsyncpa [#allocation6], 1 }
 0x1ac   :  { %560 = vsyncpa [#allocation4], 1 }
 0x1ad   :  { %562 = vsyncpa [#allocation4 + $0x1], 1 }

// kernel: tpu_custom_call.1
= control target key start
LH: loop header
LB: loop body
LE: loop exit
PB: predicated region body
PF: predicated region fallthrough
CT: control target
= control target key end

     0   :  { %9 = vsyncpa [#allocation3], 0  ;;  %s1233_s0 = inlined_call_operand.hbm [shape: f32[1,128], index: 0, kind: input, shape index: {}]   ;;  %s1234_s1 = inlined_call_operand.vmem [shape: f32[1,128], index: 1, kind: input, shape index: {}]   ;;  %s1235_s2 = inlined_call_operand.vmem [shape: f32[1,128], index: 2, kind: input, shape index: {}]   ;;  %s1236_s3 = inlined_call_operand.hbm [shape: bf16[128,128], index: 3, kind: input, shape index: {}]   ;;  %s1237_s4 = inlined_call_operand.hbm [shape: f32[16,128], index: 4, kind: output, shape index: {}]  }
   0x1   :  { %10 = vsyncpa [#allocation6], 0 }
   0x2   :  { %11 = vsyncpa [#allocation4], 0 }
   0x3   :  { %13 = vsyncpa [#allocation4 + $0x1], 0  ;;  %s1002_s15 = smov 0   ;;  %s1004_s16 = smov 0  }
   0x4   :  { %s1006_s17 = smov 0   ;;  %s1008_s18 = smov 0  }
   0x5   :  { %s1010_s19 = smov 0   ;;  %s1012_s20 = smov 0  }
   0x6 LB: > { %s630_s21 = sadd.s32 4294967295, %s962_s20   ;;  %s631_s22 = sadd.s32 4294967294, %s962_s20   ;;  %s962_s20 = sphi %s1012_s20, %s19_s20   ;;  %s958_s19 = sphi %s1010_s19, %s1255_s19   ;;  %s954_s18 = sphi %s1008_s18, %s1254_s18   ;;  %s950_s17 = sphi %s1006_s17, %s1253_s17   ;;  %s946_s16 = sphi %s1004_s16, %s1252_s16   ;;  %s942_s15 = sphi %s1002_s15, %s1251_s15  }
   0x7   : > { %s28_s23 = sadd.s32 1, %s958_s19  ;;  %s134_s24 = sadd.s32 1, %s950_s17 }
   0x8   : > { %p29_p0 = scmp.ge.s32.totalorder %s28_s23, 2  ;;  %p144_p1 = scmp.ne.s32.totalorder %s950_s17, %s946_s16 }
   0x9   : > { %p145_p2 = scmp.eq.s32.totalorder %s630_s21, 1  ;;  %p150_p3 = scmp.ne.s32.totalorder %s946_s16, %s942_s15 }
   0xa   : > { %s1257_s23 = smov (%p29_p0, %s28_s23), 0  ;;  %p151_p5 = scmp.eq.s32.totalorder %s631_s22, 1 }
   0xb   : > { %p1042_p4 = por %p145_p2, %p144_p1  ;;  %s129_s26 = ssub.s32 %s958_s19, %s1257_s23 }
   0xc   : > { %p632_p6 = scmp.ge.s32.totalorder %s962_s20, 1  ;;  %p132_p7 = scmp.eq.s32.totalorder %s129_s26, 0 }
   0xd   : > { %s1242_s25 = scalar_select %p1042_p4, 1, 0 }
   0xe   : > { %p1049_p8 = por %p151_p5, %p150_p3  ;;  %p158_p9 = scmp.lt.s32.totalorder %s962_s20, 3 }
   0xf   : > { %s1055_s28 = scalar_select %p132_p7, %s950_s17, %s134_s24  }
  0x10   : > { %s1243_s27 = scalar_select %p1049_p8, 1, 0 }
  0x11   : > { %p1057_p10 = pnand %p632_p6, %p158_p9  ;;  %p1061_p11 = scmp.eq.s32.totalorder %s630_s21, 0 }
  0x12   : > { %s964_s5 = smov [#allocation2]   ;;  %s965_s7 = smov [#allocation5]  }
  0x13   : > { %s1244_s29 = scalar_select %p1057_p10, 1, 0 }
  0x14   : > { %s1245_s30 = scalar_select %p1061_p11, 1, 0 }
  0x15   : > { %p732_p12 = pneg %p1057_p10  ;;  %s171_s6 = sshll.u32 %s964_s5, 4  ;;  %s172_s6 = int_to_ptr.vmem [resolvable:$true] %s171_s6 }
  0x16   : > { %s192_s8 = sshll.u32 %s965_s7, 4  ;;  %s820_s12 = scalar_lea.hbm %s1233_s0, 16  ;;  %s1073_s8 = int_to_ptr.vmem [resolvable:$true] %s192_s8 }
  0x17   : > { %p1069_p13 = pnand %p1061_p11, %p732_p12  ;;  %p821_p0 = scmp.ne.s32.totalorder %s1233_s0, %s820_s12 }
  0x18   : > { %p827_p5 = scmp.lt.u32.totalorder %s820_s12, %s1233_s0 }
  0x19   : > { %p822_p1 = pneg %p1069_p13 }
  0x1b   : > { %p823_p2 = pnand %p822_p1, %p821_p0 }
  0x1d   : > { %p824_p3 = pneg %p823_p2 }
  0x1f   : > { %p829_p6 = pnand %p827_p5, %p824_p3 }
  0x21   : > { %832 = shalt.err (!%p829_p6)
}
  0x22   : > { %s833_s24 = scalar_lea.vmem %s172_s6, 16  ;;  %s840_s26 = scalar_lea.vmem %s172_s6, 32 }
  0x23   : > { %p834_p7 = scmp.ne.s32.totalorder %s172_s6, %s833_s24  ;;  %p841_p8 = scmp.lt.s32.totalorder %s172_s6, %s172_s6 }
  0x24   : > { %p842_p4 = scmp.lt.s32.totalorder %s840_s26, %s833_s24 }
  0x25   : > { %p836_p9 = pnand %p834_p7, %p822_p1 }
  0x26   : > { %p843_p11 = por %p842_p4, %p841_p8 }
  0x27   : > { %p837_p12 = pneg %p836_p9 }
  0x29   : > { %p844_p10 = pnand %p843_p11, %p837_p12 }
  0x2b   : > { %847 = shalt.err (!%p844_p10)
}
  0x2c   : > { %735 = dma.hbm_to_vmem [thread:$0]  (!%p1069_p13), %s1233_s0, 16, %s172_s6, [#allocation3]  }
  0x2d   : > { %s848_s12 = scalar_lea.hbm %s1236_s3, 1024 }
  0x2e   : > { %p849_p0 = scmp.ne.s32.totalorder %s1236_s3, %s848_s12  ;;  %p855_p10 = scmp.lt.u32.totalorder %s848_s12, %s1236_s3 }
  0x30   : > { %p851_p4 = pnand %p849_p0, %p822_p1 }
  0x32   : > { %p852_p8 = pneg %p851_p4 }
  0x34   : > { %p857_p11 = pnand %p855_p10, %p852_p8 }
  0x36   : > { %860 = shalt.err (!%p857_p11)
}
  0x37   : > { %s861_s6 = scalar_lea.vmem %s1073_s8, 1024  ;;  %p869_p6 = scmp.lt.s32.totalorder %s1073_s8, %s1073_s8 }
  0x38   : > { %p862_p2 = scmp.ne.s32.totalorder %s1073_s8, %s861_s6  ;;  %p870_p7 = scmp.lt.s32.totalorder %s861_s6, %s861_s6 }
  0x3a   : > { %p864_p3 = pnand %p862_p2, %p822_p1  ;;  %p871_p9 = por %p870_p7, %p869_p6 }
  0x3c   : > { %p865_p5 = pneg %p864_p3 }
  0x3e   : > { %p872_p12 = pnand %p871_p9, %p865_p5 }
  0x40   : > { %875 = shalt.err (!%p872_p12)
}
  0x41   : > { %s966_s24 = smov 64   ;;  %s967_s26 = smov 4  }
  0x42   : > { %738 = dma.hbm_to_vmem [thread:$0]  (!%p1069_p13), %s1236_s3, 1024, %s1073_s8, [#allocation6], %s966_s24, %s966_s24, %s967_s26  }
  0x43   : > { %p1247_p0 = scmp.ne.s32.totalorder %s1244_s29, 0 }
  0x44   : > { %p1248_p1 = scmp.ne.s32.totalorder (!%p1247_p0), %s1245_s30, 0 }
  0x45   : > { %208 = sbr.rel (%p1247_p0) target bundleno = 409 (0x199), region = 36 }
  0x4c   : > { %929 = dma.done.wait (%p1248_p1), [#allocation3], 16  }
  0x4d   : > { %931 = vsyncadd (%p1248_p1), [#allocation3], 4294967280 }
  0x4e   : > { %933 = dma.done.wait (%p1248_p1), [#allocation6], 1024  }
  0x4f   : > { %935 = vsyncadd (%p1248_p1), [#allocation6], 4294966272  ;;  %v241_v0 = vlaneseq  ;;  %v968_v1 = vmov 0.0   ;;  %vm969_vm0 = vmmov 0   ;;  %s640_s29 = sshll.u32 %s954_s18, 3  ;;  %v808_v4 = vld [vmem:[#allocation5] sm:$0xff]  }
  0x50   : > { %698 = vmatprep.subr.bf16.mxu1 %v968_v1  ;;  %678 = vmatprep.subr.bf16.mxu0 %v968_v1  ;;  %v243_v3 = vstv %s640_s29  ;;  %v809_v6 = vld [vmem:[#allocation5 + $0x8] sm:$0xff]   ;;  %v810_v8 = vld [vmem:[#allocation5 + $0x10] sm:$0xff]   ;;  %v641_v9 = vld [vmem:[#allocation2] ss:$0 sm:$0xff]  ;;  %v970_v27 = vmov 683565275  }
  0x51   : > { %714 = vmatprep.mubr.msk.bf16.mxu1 %vm969_vm0, %v968_v1  ;;  %694 = vmatprep.mubr.msk.bf16.mxu0 %vm969_vm0, %v968_v1  ;;  %v242_v2 = vshrl.u32 %v241_v0, 7  ;;  %v642_v10 = vld [vmem:[%s1234_s1] ss:$0 sm:$0xff]  ;;  %v812_v15 = vld [vmem:[#allocation5 + $0x20] sm:$0xff]   ;;  %v813_v18 = vld [vmem:[#allocation5 + $0x28] sm:$0xff]   ;;  %s233_s9 = sand.u32 1, %s946_s16  }
  0x52   : > { %699 = vmatpush3.bf16.msra.mxu1 %v808_v4  ;;  %679 = vmatpush3.bf16.msra.mxu0 %v808_v4  ;;  %v811_v12 = vld [vmem:[#allocation5 + $0x18] sm:$0xff]   ;;  %v814_v21 = vld [vmem:[#allocation5 + $0x30] sm:$0xff]   ;;  %v971_v29 = vmov 2475754826   ;;  %v972_v32 = vmov 2131351028  }
  0x53   : > { %v244_v5 = vadd.s32 %v243_v3, %v242_v2  ;;  %700 = vmatprep.subr.bf16.mxu1 %v968_v1  ;;  %680 = vmatprep.subr.bf16.mxu0 %v968_v1  ;;  %v815_v31 = vld [vmem:[#allocation5 + $0x38] sm:$0xff]   ;;  %v973_v34 = vmov 2102212464   ;;  %v974_v36 = vmov 920167782   ;;  %s639_s10 = sshll.u32 %s233_s9, 3 }
  0x54   : > { %v975_v44 = vmov 1326507024   ;;  %s657_s13 = sshll.u32 %s954_s18, 7  ;;  %s235_s14 = scalar_lea.vmem [#allocation7], %s639_s10 }
  0x55   : > { %v245_v7 = vcvt.s32.f32 %v244_v5  ;;  %s538_s21 = sshll.u32 %s235_s14, 4  ;;  %s1186_s24 = scalar_lea.hbm %s1237_s4, %s657_s13  ;;  %s1188_s21 = int_to_ptr.vmem [resolvable:$true] %s538_s21 }
  0x56   : > { %701 = vmatpush3.bf16.msra.mxu1 %v809_v6  ;;  %681 = vmatpush3.bf16.msra.mxu0 %v809_v6  ;;  %s524_s26 = scalar_lea.sflag [#allocation4], %s233_s9  ;;  %s876_s18 = scalar_lea.vmem %s1188_s21, 128 }
  0x57   : > { %702 = vmatprep.subr.bf16.mxu1 %v968_v1  ;;  %682 = vmatprep.subr.bf16.mxu0 %v968_v1  ;;  %v253_v11 = vmul.f32 %v641_v9, %v245_v7  ;;  %p877_p13 = scmp.ne.s32.totalorder %s1188_s21, %s876_s18  ;;  %p1249_p4 = scmp.ne.s32.totalorder %s1242_s25, 0 }
  0x58   : > { %s976_s5 = smov [#allocation7]  }
  0x59   : > { %v1146_v13 = vadd.f32 %v642_v10, %v253_v11  ;;  %p878_p8 = pnand %p877_p13, %p1249_p4  ;;  %s880_s7 = sshll.u32 %s976_s5, 4  ;;  %s881_s7 = int_to_ptr.vmem [resolvable:$false] %s880_s7 }
  0x5a   : > { %703 = vmatpush3.bf16.msra.mxu1 %v810_v8  ;;  %683 = vmatpush3.bf16.msra.mxu0 %v810_v8  ;;  %s882_s29 = scalar_lea.vmem %s881_s7, 256  ;;  %p883_p11 = scmp.lt.s32.totalorder %s1188_s21, %s881_s7 }
  0x5b   : > { %704 = vmatprep.subr.bf16.mxu1 %v968_v1  ;;  %684 = vmatprep.subr.bf16.mxu0 %v968_v1  ;;  %v265_v14 = vand.u32 2139095040, %v1146_v13  ;;  %v262_v19 = vand.u32 2147483647, %v1146_v13  ;;  %vm264_vm8 = vcmp.lt.s32.totalorder %v1146_v13, 0  ;;  %vm354_vm13 = vweird.f32 %v1146_v13  ;;  %p879_p10 = pneg %p878_p8  ;;  %p884_p2 = scmp.lt.s32.totalorder %s882_s29, %s876_s18 }
  0x5d   : > { %v266_v16 = vshrl.u32 %v265_v14, 23  ;;  %v269_v23 = vand.u32 8388607, %v262_v19  ;;  %vm263_vm9 = vcmp.le.f32.partialorder %v262_v19, 0.7853982  ;;  %p885_p3 = por %p884_p2, %p883_p11 }
  0x5e   : > { %705 = vmatpush3.bf16.msra.mxu1 %v811_v12  ;;  %685 = vmatpush3.bf16.msra.mxu0 %v811_v12 }
  0x5f   : > { %706 = vmatprep.subr.bf16.mxu1 %v968_v1  ;;  %686 = vmatprep.subr.bf16.mxu0 %v968_v1  ;;  %v643_v17 = vadd.s32 4294967169, %v266_v16  ;;  %v270_v38 = vor.u32 8388608, %v269_v23  ;;  %p886_p5 = pnand %p885_p3, %p879_p10 }
  0x61   : > { %v272_v20 = vadd.s32 1, %v643_v17  ;;  %v310_v53 = vshll.u32 %v270_v38, 8 }
  0x62   : > { %707 = vmatpush3.bf16.msra.mxu1 %v812_v15  ;;  %687 = vmatpush3.bf16.msra.mxu0 %v812_v15 }
  0x63   : > { %708 = vmatprep.subr.bf16.mxu1 %v968_v1  ;;  %688 = vmatprep.subr.bf16.mxu0 %v968_v1  ;;  %vm273_vm1 = vcmp.gt.s32.totalorder %v272_v20, 0 }
  0x64   : > { %v274_v22 = vsel %vm273_vm1, %v272_v20, 0 }
  0x65   : > { %v276_v24 = vand.u32 31, %v274_v22  ;;  %v275_v25 = vshrl.u32 %v274_v22, 5 }
  0x66   : > { %709 = vmatpush3.bf16.msra.mxu1 %v813_v18  ;;  %689 = vmatpush3.bf16.msra.mxu0 %v813_v18 }
  0x67   : > { %710 = vmatprep.subr.bf16.mxu1 %v968_v1  ;;  %690 = vmatprep.subr.bf16.mxu0 %v968_v1  ;;  %v277_v26 = vsub.s32 32, %v276_v24  ;;  %v279_v28 = vshll.u32 %v970_v27, %v276_v24  ;;  %v282_v30 = vshll.u32 %v971_v29, %v276_v24  ;;  %v285_v33 = vshll.u32 %v972_v32, %v276_v24 }
  0x68   : > { %v288_v35 = vshll.u32 %v973_v34, %v276_v24  ;;  %v291_v37 = vshll.u32 %v974_v36, %v276_v24  ;;  %vm294_vm2 = vcmp.lt.s32.totalorder %v275_v25, 1  ;;  %vm297_vm3 = vcmp.lt.s32.totalorder %v275_v25, 4 }
  0x69   : > { %v278_v39 = vshrl.u32 %v970_v27, %v277_v26  ;;  %v280_v40 = vshrl.u32 %v971_v29, %v277_v26  ;;  %v283_v41 = vshrl.u32 %v972_v32, %v277_v26  ;;  %v286_v42 = vshrl.u32 %v973_v34, %v277_v26 }
  0x6a   : > { %711 = vmatpush3.bf16.msra.mxu1 %v814_v21  ;;  %691 = vmatpush3.bf16.msra.mxu0 %v814_v21  ;;  %v289_v43 = vshrl.u32 %v974_v36, %v277_v26  ;;  %v292_v45 = vshrl.u32 %v975_v44, %v277_v26  ;;  %vm296_vm4 = vcmp.lt.s32.totalorder %v275_v25, 3  ;;  %vm295_vm5 = vcmp.lt.s32.totalorder %v275_v25, 2 }
  0x6b   : > { %712 = vmatprep.subr.bf16.mxu1 %v968_v1  ;;  %692 = vmatprep.subr.bf16.mxu0 %v968_v1  ;;  %v281_v46 = vor.u32 %v280_v40, %v279_v28  ;;  %v284_v47 = vor.u32 %v283_v41, %v282_v30  ;;  %v287_v48 = vor.u32 %v286_v42, %v285_v33 }
  0x6c   : > { %v290_v49 = vor.u32 %v289_v43, %v288_v35  ;;  %v293_v50 = vor.u32 %v292_v45, %v291_v37 }
  0x6d   : > { %v298_v51 = vsel %vm294_vm2, %v278_v39, %v281_v46  ;;  %v302_v52 = vsel %vm294_vm2, %v281_v46, %v284_v47  ;;  %v299_v54 = vsel %vm297_vm3, %v287_v48, 2102212464  ;;  %v306_v56 = vsel %vm294_vm2, %v284_v47, %v287_v48 }
  0x6e   : > { %713 = vmatpush3.bf16.msra.mxu1 %v815_v31  ;;  %693 = vmatpush3.bf16.msra.mxu0 %v815_v31  ;;  %v303_v55 = vsel %vm297_vm3, %v290_v49, 920167782  ;;  %v307_v57 = vsel %vm297_vm3, %v293_v50, 1326507024  ;;  %v300_v58 = vsel %vm296_vm4, %v284_v47, %v299_v54 }
  0x6f   : > { %v304_v59 = vsel %vm296_vm4, %v287_v48, %v303_v55  ;;  %v308_v60 = vsel %vm296_vm4, %v290_v49, %v307_v57  ;;  %v301_v61 = vsel %vm295_vm5, %v298_v51, %v300_v58 }
  0x70   : > { %v305_v62 = vsel %vm295_vm5, %v302_v52, %v304_v59  ;;  %v309_v63 = vsel %vm295_vm5, %v306_v56, %v308_v60  ;;  %v317_v4 = vmul.u32 %v310_v53, %v301_v61 }
  0x71   : > { %v1163_v0 = vmul.u32.u64.low %v310_v53, %v309_v63  ;;  %v1164_v1 = vmul.u32.u64.high %v310_v53, %v309_v63, %v1163_v0  ;;  %v1166_v2 = vmul.u32.u64.low %v310_v53, %v305_v62  ;;  %v1167_v3 = vmul.u32.u64.high %v310_v53, %v305_v62, %v1166_v2 }
  0x73   : > { %vm319_vm6 = vc.u32 %v1164_v1, %v1166_v2  ;;  %v320_v5 = vadd.s32 1, %v1167_v3  ;;  %v318_v17 = vadd.s32 %v1166_v2, %v1164_v1 }
  0x75   : > { %v321_v6 = vsel %vm319_vm6, %v320_v5, %v1167_v3 }
  0x76   : > { %v322_v7 = vadd.s32 %v321_v6, %v317_v4 }
  0x78   : > { %v323_v8 = vadd.s32 536870912, %v322_v7 }
  0x7a   : > { %v324_v9 = vshrl.u32 %v323_v8, 30 }
  0x7c   : > { %v325_v10 = vshll.u32 %v324_v9, 30  ;;  %v348_v30 = vsub.s32 4, %v324_v9 }
  0x7e   : > { %v326_v11 = vsub.s32 %v322_v7, %v325_v10  ;;  %v349_v33 = vsel %vm264_vm8, %v348_v30, %v324_v9 }
  0x7f   : > { %v351_v36 = vsel %vm263_vm9, 0, %v349_v33 }
  0x80   : > { %v328_v12 = vsub.s32 0, %v326_v11  ;;  %v355_v37 = vadd.s32 3, %v351_v36 }
  0x82   : > { %v644_v14 = vmin.u32 %v328_v12, %v326_v11  ;;  %v356_v38 = vand.u32 3, %v355_v37 }
  0x84   : > { %v330_v15 = vclz %v644_v14  ;;  %vm361_vm10 = vcmp.eq.s32.totalorder %v356_v38, 2  ;;  %vm358_vm11 = vcmp.eq.s32.totalorder %v356_v38, 0  ;;  %vm357_vm12 = vcmp.lt.s32.totalorder %v356_v38, 2 }
  0x86   : > { %v645_v16 = vadd.s32 4294967294, %v330_v15 }
  0x88   : > { %vm646_vm7 = vcmp.lt.s32.totalorder %v645_v16, 0 }
  0x89   : > { %v333_v18 = vsel %vm646_vm7, 0, %v645_v16 }
  0x8a   : > { %v334_v20 = vsub.s32 32, %v333_v18  ;;  %v335_v21 = vshll.u32 %v326_v11, %v333_v18  ;;  %v338_v22 = vsub.s32 4294967266, %v333_v18 }
  0x8c   : > { %v336_v23 = vshrl.u32 %v318_v17, %v334_v20  ;;  %v339_v24 = vadd.s32 127, %v338_v22 }
  0x8e   : > { %v337_v25 = vor.u32 %v336_v23, %v335_v21  ;;  %v340_v26 = vshll.u32 %v339_v24, 23 }
  0x90   : > { %v341_v27 = vor.u32 4788187, %v340_v26  ;;  %v344_v28 = vcvt.s32.f32 %v337_v25 }
  0x92   : > { %v342_v29 = vand.u32 2147483647, %v341_v27 }
  0x94   : > { %v345_v31 = vmul.f32 %v344_v28, %v342_v29 }
  0x96   : > { %v346_v32 = vxor.u32 2147483648, %v345_v31 }
  0x98   : > { %v347_v34 = vsel %vm264_vm8, %v346_v32, %v345_v31 }
  0x99   : > { %v350_v35 = vsel %vm263_vm9, %v1146_v13, %v347_v34  ;;  %v655_v13 = vld [vmem:[%s1235_s2] ss:$0 sm:$0xff] }
  0x9a   : > { %816 = vcosq.f32 %v350_v35 }
  0x9b   : > { %818 = vsinq.f32 %v350_v35 }
  0xa4   : > { %v817_v39 = vpop.eup %816 }
  0xa5   : > { %v819_v40 = vpop.eup %818  ;;  %v362_v41 = vxor.u32 2147483648, %v817_v39 }
  0xa6   : > { %v359_v42 = vxor.u32 2147483648, %v819_v40 }
  0xa7   : > { %v363_v19 = vsel %vm361_vm10, %v362_v41, %v819_v40 }
  0xa8   : > { %v360_v43 = vsel %vm358_vm11, %v817_v39, %v359_v42 }
  0xa9   : > { %v364_v44 = vsel %vm357_vm12, %v360_v43, %v363_v19 }
  0xaa   : > { %v365_v45 = vsel %vm354_vm13, nan, %v364_v44 }
  0xab   : > { %v382_v46 = vpack.c.bf16 %v365_v45, %v365_v45 }
  0xad   : > { %v383_v47 = vunpack.c.l.bf16 %v382_v46  ;;  %715 = vmatmul.mubr.bf16.vlgmr.msra.gmra.mrb[0].mxu1 %v382_v46 }
  0xaf   : > { %v384_v48 = vsub.f32 %v365_v45, %v383_v47 }
  0xb1   : > { %v385_v49 = vpack.c.bf16 %v384_v48, %v384_v48 }
  0xb3   : > { %695 = vmatmul.mubr.bf16.vlgmr.msra.gmra.mrb[0].mxu0 %v385_v49 }
 0x180   : > { %v508_v50 = vpop.f32.mrb[0].mxu1 }
 0x181   : > { %v716_v51 = vpop.f32.mrb[1].mxu1 }
 0x182   : > { %v511_v52 = vpop.f32.mrb[2].mxu1 }
 0x183   : > { %v717_v53 = vpop.f32.mrb[3].mxu1 }
 0x186   : > { %v468_v54 = vpop.f32.mrb[0].mxu0 }
 0x187   : > { %v509_v55 = vadd.f32 %v508_v50, %v468_v54  ;;  %v696_v56 = vpop.f32.mrb[1].mxu0 }
 0x188   : > { %v471_v57 = vpop.f32.mrb[2].mxu0 }
 0x189   : > { %v521_v58 = vadd.f32 %v655_v13, %v509_v55  ;;  %v697_v59 = vpop.f32.mrb[3].mxu0 }
 0x18b   : > { %522 = vst [vmem:[%s235_s14] sm:$0xff] %v521_v58 }
 0x18c   : > { %889 = shalt.err (!%p886_p5)
}
 0x18d   : > { %s890_s30 = scalar_lea.hbm %s1186_s24, 128  ;;  %s894_s10 = scalar_lea.hbm %s1237_s4, 256 }
 0x18e   : > { %p891_p6 = scmp.ne.s32.totalorder %s1186_s24, %s890_s30  ;;  %p895_p12 = scmp.lt.u32.totalorder %s1186_s24, %s1237_s4 }
 0x18f   : > { %p896_p0 = scmp.lt.u32.totalorder %s894_s10, %s890_s30  ;;  %p898_p13 = scmp.lt.u32.totalorder %s890_s30, %s1186_s24 }
 0x190   : > { %p892_p7 = pnand %p891_p6, %p1249_p4 }
 0x191   : > { %p897_p1 = por %p896_p0, %p895_p12 }
 0x192   : > { %p893_p9 = pneg %p892_p7 }
 0x193   : > { %p899_p8 = por %p898_p13, %p897_p1 }
 0x195   : > { %p900_p10 = pnand %p899_p8, %p893_p9 }
 0x197   : > { %903 = shalt.err (!%p900_p10)
}
 0x198   : > { %730 = dma.vmem_to_hbm [thread:$0]  (%p1249_p4), %s1188_s21, 128, %s1186_s24, %s524_s26  }
 0x199 PF: > { %p747_p11 = scmp.ge.s32.totalorder %s962_s20, 2  ;;  %s550_s13 = sand.u32 1, %s942_s15  }
 0x19a   : > { %p1250_p2 = scmp.ne.s32.totalorder %s1243_s27, 0  ;;  %s551_s14 = scalar_lea.sflag [#allocation4], %s550_s13 }
 0x19c   : > { %p740_p3 = pnand %p747_p11, %p1250_p2 }
 0x19e   : > { %937 = dma.done.wait (!%p740_p3), %s551_s14, 128  }
 0x19f   : > { %939 = vsyncadd (!%p740_p3), %s551_s14, 4294967168  ;;  %s19_s20 = sadd.s32 1, %s962_s20   ;;  %s1251_s15 = smov %s946_s16 }
 0x1a0   : > { %p16_p5 = scmp.ge.s32.totalorder %s19_s20, 4   ;;  %s1252_s16 = smov %s950_s17 }
 0x1a1   : > { %s1253_s17 = smov %s1055_s28  ;;  %s1254_s18 = smov %s958_s19 }
 0x1a2   : > { %s1255_s19 = smov %s1257_s23  ;;  %18 = sbr.rel (!%p16_p5) target bundleno = 6 (0x6), region = 81 }
 0x1a9   :  { %556 = vsyncpa [#allocation3], 1 }
 0x1aa   :  { %558 = vsyncpa [#allocation3 + $0x1], 1 }
 0x1ab   :  { %559 = vsyncpa [#allocation6], 1 }
 0x1ac   :  { %560 = vsyncpa [#allocation4], 1 }
 0x1ad   :  { %562 = vsyncpa [#allocation4 + $0x1], 1 }

</bundles_post_ra>
